<compile_context>
chip_gen: v7x
topology: tpu7x:2x2x1
jax: 0.10.0
libtpu: 0.0.40
codegen_flags: <defaults>
</compile_context>

<pallas_src>
import jax
import jax.numpy as jnp
from jax.experimental import pallas as pl
from jax.experimental.pallas import tpu as pltpu


def _patch_embed_kernel(patches_ref, w_ref, posb_ref, o_ref):
    # patches_ref: (M, K)  bf16  M = Bt*(N+1); row 0 of each batch is zero
    # w_ref:       (K, D)  bf16  conv weight reshaped + transposed
    # posb_ref:    (M, D)  f32   fused bias: pos (+ conv_b / + cls) tiled Bt times
    # o_ref:       (M, D)  out   one aligned full-block store
    pe = jnp.dot(patches_ref[...], w_ref[...], preferred_element_type=jnp.float32)
    o_ref[...] = (pe + posb_ref[...]).astype(o_ref.dtype)


def _tpu_generation_info():
    """Best-effort (vmem_capacity_bytes, tensorcores_per_chip) for this TPU."""
    kind = ""
    try:
        kind = jax.devices()[0].device_kind.lower()
    except Exception:
        pass
    is_v7 = ("v7" in kind) or ("7x" in kind)
    vmem_bytes = None
    try:
        vmem_bytes = int(pltpu.get_tpu_info().vmem_capacity_bytes)
    except Exception:
        vmem_bytes = None
    if not vmem_bytes or vmem_bytes <= 0:
        vmem_bytes = (64 << 20) if is_v7 else (128 << 20)
    num_tc = 2 if is_v7 else 1
    return vmem_bytes, num_tc


def _pick_batch_tile(B, rows_per_batch, bytes_per_batch, vmem_bytes, num_tc):
    """Largest divisor Bt of B whose per-step block is ~4-16 MiB, keeping the
    block's sublane dim (Bt*rows_per_batch) 8-aligned (or Bt == B -> block
    equals the full array dims). Only forces >= num_tc grid steps on 2-TC
    chips (v7x megacore); single-TC chips may take one big step."""
    def ok(bt):
        return B % bt == 0 and (bt == B or (bt * rows_per_batch) % 8 == 0)

    if B <= 1:
        return 1
    target = min(max(vmem_bytes // 6, 4 << 20), 16 << 20)
    if num_tc >= 2:
        target = min(target, 8 << 20)
    cap = max(1, target // max(1, bytes_per_batch))
    if num_tc >= 2:
        cap = min(cap, max(1, B // num_tc))
    cap = int(min(cap, B))
    best = None
    for bt in range(1, cap + 1):
        if ok(bt):
            best = bt
    if best is None:
        # No 8-aligned divisor under the cap: take the smallest valid one.
        # TODO(synk): for very large odd B with no small aligned divisor this
        # can pick Bt == B; acceptable for typical ViT batch sizes.
        for bt in range(1, B + 1):
            if ok(bt):
                best = bt
                break
    return best


def patch_embedding(image, conv_w, conv_b, cls_token, pos_emb, patch_size,
                    gemm_dtype=jnp.bfloat16, out_dtype=jnp.float32):
    """image: (B, C, H, W) NCHW float32. Returns (B, N+1, D) in out_dtype.

    Numerics note: GEMM operands are bf16 (MXU path) with f32 accumulation, so
    results differ from a full-f32 conv at the bf16 rounding level."""
    B, C, H, W = image.shape
    D = conv_w.shape[0]
    P = patch_size
    Hp, Wp = H // P, W // P
    N = Hp * Wp
    K = C * P * P
    Np1 = N + 1

    # --- im2col in bf16 (cast BEFORE transpose so the HBM transpose pass
    # writes bf16, not f32).  (B,C,Hp,P,Wp,P)->(B,Hp,Wp,C,P,P)->(B,N,K)
    patches = image.astype(gemm_dtype).reshape(B, C, Hp, P, Wp, P)
    patches = patches.transpose(0, 2, 4, 1, 3, 5).reshape(B, N, K)
    # Prepend one zero row per batch: the class-token row rides through the
    # GEMM (0 @ W = 0) so the kernel can do a single aligned full-block store.
    patches = jnp.pad(patches, ((0, 0), (1, 0), (0, 0)))
    patches2d = patches.reshape(B * Np1, K)                 # contiguous -> free

    w_mat = conv_w.reshape(D, K).T.astype(gemm_dtype)       # (K, D) bf16

    # Fused f32 bias: row 0 = class_token + pos[0]; rows 1.. = pos[1:] + conv_b.
    pos = pos_emb.reshape(Np1, D).astype(jnp.float32)
    posb = jnp.concatenate(
        [cls_token.reshape(1, D).astype(jnp.float32) + pos[0:1],
         pos[1:] + conv_b.reshape(1, D).astype(jnp.float32)], axis=0)  # (Np1, D)

    # --- generation-aware tiling / VMEM budget.
    vmem_bytes, num_tc = _tpu_generation_info()
    gemm_bytes = jnp.dtype(gemm_dtype).itemsize
    out_bytes = jnp.dtype(out_dtype).itemsize
    bytes_per_batch = Np1 * (K * gemm_bytes + D * out_bytes + D * 4)
    Bt = _pick_batch_tile(B, Np1, bytes_per_batch, vmem_bytes, num_tc)
    M = Bt * Np1
    grid = (B // Bt,)

    posb_tiled = jnp.tile(posb, (Bt, 1))                    # (M, D) grid-invariant

    vmem_est = (2 * M * K * gemm_bytes      # patches blocks (double-buffered)
                + 2 * M * D * out_bytes     # output blocks (double-buffered)
                + 2 * K * D * gemm_bytes    # weight (resident; 2 bufs counted)
                + 2 * M * D * 4)            # fused bias (resident; 2 bufs counted)
    ceiling = max(16 << 20, int(vmem_bytes * 0.85))   # headroom (v7x: ~54 MiB)
    vmem_limit = int(min(max(vmem_est + (4 << 20), 16 << 20), ceiling))

    out2d = pl.pallas_call(
        _patch_embed_kernel,
        out_shape=jax.ShapeDtypeStruct((B * Np1, D), out_dtype),
        grid=grid,
        in_specs=[
            pl.BlockSpec((M, K), lambda b: (b, 0)),
            pl.BlockSpec((K, D), lambda b: (0, 0)),
            pl.BlockSpec((M, D), lambda b: (0, 0)),
        ],
        out_specs=pl.BlockSpec((M, D), lambda b: (b, 0)),
        compiler_params=pltpu.CompilerParams(
            dimension_semantics=("parallel",),
            vmem_limit_bytes=vmem_limit),
    )(patches2d, w_mat, posb_tiled)
    return out2d.reshape(B, Np1, D)


def _reference(image, conv_w, conv_b, cls_token, pos_emb, patch_size):
    """Pure-JAX reference replicating the PyTorch forward (eval mode)."""
    B = image.shape[0]
    D = conv_w.shape[0]
    conv_out = jax.lax.conv_general_dilated(
        image, conv_w,
        window_strides=(patch_size, patch_size),
        padding="VALID",
        dimension_numbers=("NCHW", "OIHW", "NCHW"),
        precision=jax.lax.Precision.HIGHEST,
    ) + conv_b.reshape(1, D, 1, 1)                              # (B, D, Hp, Wp)
    Bc, Dc, Hp, Wp = conv_out.shape
    patch_emb = conv_out.reshape(B, D, Hp * Wp).transpose(0, 2, 1)  # b (h w) c
    cls = jnp.broadcast_to(cls_token, (B, 1, D))
    return jnp.concatenate([cls, patch_emb], axis=1) + pos_emb


if __name__ == "__main__":
    # Small shapes consistent with the module (embedding_dim=32, n_channels=4,
    # img_size=16, patch_size=4 -> N=16). NOTE: production ViT shapes have
    # K, D multiples of 128; lane-width-32 here under-utilizes MXU/VPU, so do
    # not draw performance conclusions from this config.
    B, C, IMG, P, D = 2, 4, 16, 4, 32
    N = (IMG // P) ** 2

    key = jax.random.PRNGKey(0)
    k_img, k_w, k_b, k_cls, k_pos = jax.random.split(key, 5)

    image = jax.random.normal(k_img, (B, C, IMG, IMG), dtype=jnp.float32)
    conv_w = jax.random.normal(k_w, (D, C, P, P), dtype=jnp.float32) * 0.02
    conv_b = jax.random.normal(k_b, (D,), dtype=jnp.float32) * 0.02
    cls_token = jax.random.normal(k_cls, (1, 1, D), dtype=jnp.float32)
    pos_emb = jax.random.normal(k_pos, (1, N + 1, D), dtype=jnp.float32)

    out = patch_embedding(image, conv_w, conv_b, cls_token, pos_emb, P)
    out = jax.block_until_ready(out)
    assert out.shape == (B, N + 1, D), out.shape

    # Tight check vs a reference using the same bf16-rounded GEMM operands.
    img_bf = image.astype(jnp.bfloat16).astype(jnp.float32)
    w_bf = conv_w.astype(jnp.bfloat16).astype(jnp.float32)
    ref_bf16 = _reference(img_bf, w_bf, conv_b, cls_token, pos_emb, P)
    assert jnp.allclose(out, ref_bf16, atol=1e-4, rtol=1e-4), \
        "mismatch vs bf16-consistent reference"

    # Loose check vs the full-f32 PyTorch-equivalent forward (bf16 GEMM noise).
    ref_f32 = _reference(image, conv_w, conv_b, cls_token, pos_emb, P)
    assert jnp.allclose(out, ref_f32, atol=3e-2, rtol=3e-2), \
        "mismatch vs f32 reference"

    print("KERNEL_OK")
</pallas_src>

<mosaic_0001>
module attributes {stable_mosaic.version = 11 : i64} {
  func.func @_patch_embed_kernel(%arg0: i32, %arg1: memref<34x64xbf16, #tpu.memory_space<vmem>>, %arg2: memref<64x32xbf16, #tpu.memory_space<vmem>>, %arg3: memref<34x32xf32, #tpu.memory_space<vmem>>, %arg4: memref<34x32xf32, #tpu.memory_space<vmem>>) attributes {dimension_semantics = [#tpu.dimension_semantics<parallel>], iteration_bounds = array<i64: 1>, scalar_prefetch = 0 : i64, scratch_operands = 0 : i64, tpu.core_type = #tpu.core_type<tc>, window_params = [{transform_indices = @transform_0, window_bounds = array<i64: 34, 64>}, {pipeline_mode = #tpu.pipeline_mode<synchronous>, transform_indices = @transform_1, window_bounds = array<i64: 64, 32>}, {pipeline_mode = #tpu.pipeline_mode<synchronous>, transform_indices = @transform_2, window_bounds = array<i64: 34, 32>}, {transform_indices = @transform_3, window_bounds = array<i64: 34, 32>}]} {
    %c0 = arith.constant 0 : index
    %c0_0 = arith.constant 0 : index
    %0 = vector.load %arg1[%c0, %c0_0] : memref<34x64xbf16, #tpu.memory_space<vmem>>, vector<34x64xbf16>
    %c0_1 = arith.constant 0 : index
    %c0_2 = arith.constant 0 : index
    %1 = vector.load %arg2[%c0_1, %c0_2] : memref<64x32xbf16, #tpu.memory_space<vmem>>, vector<64x32xbf16>
    %cst = arith.constant dense<0.000000e+00> : vector<34x32xf32>
    %2 = tpu.matmul %0, %1, %cst {dimension_numbers = #tpu.dot_dimension_numbers<[1], [0], [0], [1], [0, 0, 1, 1], [], []>} : vector<34x64xbf16>, vector<64x32xbf16>, vector<34x32xf32> -> vector<34x32xf32>
    %c0_3 = arith.constant 0 : index
    %c0_4 = arith.constant 0 : index
    %3 = vector.load %arg3[%c0_3, %c0_4] : memref<34x32xf32, #tpu.memory_space<vmem>>, vector<34x32xf32>
    %4 = arith.addf %2, %3 : vector<34x32xf32>
    %c0_5 = arith.constant 0 : index
    %c0_6 = arith.constant 0 : index
    %5 = vector.load %arg4[%c0_5, %c0_6] : memref<34x32xf32, #tpu.memory_space<vmem>>, vector<34x32xf32>
    tpu.vector_store %arg4[%c0_5, %c0_6], %4 {strides = array<i32>} : memref<34x32xf32, #tpu.memory_space<vmem>>, vector<34x32xf32>,
    return
  }
  func.func @transform_0(%arg0: i32) -> (i32, i32) {
    %c0_i32 = arith.constant 0 : i32
    %c0_i32_0 = arith.constant 0 : i32
    return %arg0, %c0_i32 : i32, i32
  }
  func.func @transform_1(%arg0: i32) -> (i32, i32) {
    %c0_i32 = arith.constant 0 : i32
    %c0_i32_0 = arith.constant 0 : i32
    %c0_i32_1 = arith.constant 0 : i32
    return %c0_i32, %c0_i32_0 : i32, i32
  }
  func.func @transform_2(%arg0: i32) -> (i32, i32) {
    %c0_i32 = arith.constant 0 : i32
    %c0_i32_0 = arith.constant 0 : i32
    %c0_i32_1 = arith.constant 0 : i32
    return %c0_i32, %c0_i32_0 : i32, i32
  }
  func.func @transform_3(%arg0: i32) -> (i32, i32) {
    %c0_i32 = arith.constant 0 : i32
    %c0_i32_0 = arith.constant 0 : i32
    return %arg0, %c0_i32 : i32, i32
  }
}

</mosaic_0001>

<bundles_post_ra>
// kernel: tpu_custom_call.1
= control target key start
LH: loop header
LB: loop body
LE: loop exit
PB: predicated region body
PF: predicated region fallthrough
CT: control target
= control target key end

     0   :  { %v201_v0 = vmov 0.0   ;;  %vm202_vm0 = vmmov 0   ;;  %vm70_vm1 = vcmask 523264   ;;  %vm136_vm2 = vcmask 261120   ;;  %s281_s1 = inlined_call_operand.vmem [shape: bf16[64,32], index: 1, kind: input, shape index: {}]   ;;  %s282_s0 = inlined_call_operand.vmem [shape: bf16[34,64], index: 0, kind: input, shape index: {}]   ;;  %s283_s2 = inlined_call_operand.vmem [shape: f32[34,32], index: 2, kind: input, shape index: {}]   ;;  %s284_s3 = inlined_call_operand.vmem [shape: f32[34,32], index: 3, kind: output, shape index: {}]  }
   0x1   :  { %184 = vmatprep.subr.bf16.mxu1 %v201_v0  ;;  %v194_v1 = vld [vmem:[%s281_s1] sm:$0xff]   ;;  %164 = vmatprep.subr.bf16.mxu0 %v201_v0  ;;  %v195_v2 = vld [vmem:[%s281_s1 + $0x8] sm:$0xff]   ;;  %v196_v3 = vld [vmem:[%s281_s1 + $0x10] sm:$0xff]   ;;  %vm141_vm3 = vcmask 254976  }
   0x2   :  { %176 = vmatprep.mubr.msk.bf16.mxu1 %vm202_vm0, %v201_v0  ;;  %172 = vmatprep.mubr.msk.bf16.mxu0 %vm202_vm0, %v201_v0  ;;  %v197_v4 = vld [vmem:[%s281_s1 + $0x18] sm:$0xff]   ;;  %v198_v5 = vld [vmem:[%s282_s0 + $0x8] sm:$0xff]   ;;  %v199_v6 = vld [vmem:[%s282_s0] sm:$0xff]  }
   0x3   :  { %188 = vmatpush3.bf16.msra.mxu1 %v194_v1  ;;  %165 = vmatpush3.bf16.msra.mxu0 %v194_v1  ;;  %v200_v7 = vld [vmem:[%s282_s0 + $0x10] ss:$0 sps:$4 sm:$0x11]   ;;  %v28_v9 = vld [vmem:[%s283_s2] sm:$0xff]  ;;  %v31_v11 = vld [vmem:[%s283_s2 + $0x18] sm:$0xff] }
   0x4   :  { %185 = vmatprep.subr.bf16.mxu1 %v201_v0  ;;  %166 = vmatprep.subr.bf16.mxu0 %v201_v0  ;;  %v30_v8 = vld [vmem:[%s283_s2 + $0x10] sm:$0xff]  ;;  %v29_v13 = vld [vmem:[%s283_s2 + $0x8] sm:$0xff]  ;;  %v32_v24 = vld [vmem:[%s283_s2 + $0x20] sm:$0x3] }
   0x7   :  { %189 = vmatpush3.bf16.msra.mxu1 %v195_v2  ;;  %167 = vmatpush3.bf16.msra.mxu0 %v195_v2 }
   0x8   :  { %186 = vmatprep.subr.bf16.mxu1 %v201_v0  ;;  %168 = vmatprep.subr.bf16.mxu0 %v201_v0 }
   0xb   :  { %190 = vmatpush3.bf16.msra.mxu1 %v196_v3  ;;  %169 = vmatpush3.bf16.msra.mxu0 %v196_v3 }
   0xc   :  { %187 = vmatprep.subr.bf16.mxu1 %v201_v0  ;;  %170 = vmatprep.subr.bf16.mxu0 %v201_v0 }
   0xf   :  { %191 = vmatpush3.bf16.msra.mxu1 %v197_v4  ;;  %171 = vmatpush3.bf16.msra.mxu0 %v197_v4 }
  0x12   :  { %177 = vmatmul.mubr.msk.bf16.vlgmr.msra.gmra.mrb[0].mxu1 %vm70_vm1, %v198_v5  ;;  %173 = vmatmul.mubr.msk.bf16.vlgmr.msra.gmra.mrb[0].mxu0 %vm70_vm1, %v199_v6 }
  0x13   :  { %180 = vmatprep.mubr.msk.bf16.mxu1 %vm202_vm0, %v201_v0 }
  0x1a   :  { %181 = vmatmul.mubr.msk.bf16.gmra.mrb[4].mxu1 %vm70_vm1, %v200_v7 }
  0xe5   :  { %v122_v10 = vpop.f32.mrb[0].mxu1  ;;  %v114_v12 = vpop.f32.mrb[0].mxu0 }
  0xe6   :  { %v123_v14 = vadd.f32 %v122_v10, %v30_v8  ;;  %v178_v15 = vpop.f32.mrb[1].mxu1  ;;  %v115_v16 = vadd.f32 %v114_v12, %v28_v9  ;;  %v174_v17 = vpop.f32.mrb[1].mxu0 }
  0xe7   :  { %v125_v18 = vpop.f32.mrb[2].mxu1  ;;  %v117_v19 = vpop.f32.mrb[2].mxu0 }
  0xe8   :  { %139 = vst.msk [vmem:[%s284_s3 + $0x10] sm:$0xff] %vm136_vm2, %v123_v14  ;;  %v126_v20 = vadd.f32 %v125_v18, %v31_v11  ;;  %137 = vst.msk [vmem:[%s284_s3] sm:$0xff] %vm136_vm2, %v115_v16  ;;  %v179_v21 = vpop.f32.mrb[3].mxu1  ;;  %v118_v22 = vadd.f32 %v117_v19, %v29_v13  ;;  %v175_v23 = vpop.f32.mrb[3].mxu0 }
  0xea   :  { %140 = vst.msk [vmem:[%s284_s3 + $0x18] sm:$0xff] %vm136_vm2, %v126_v20  ;;  %138 = vst.msk [vmem:[%s284_s3 + $0x8] sm:$0xff] %vm136_vm2, %v118_v22 }
  0xed   :  { %v130_v25 = vpop.f32.mrb[4].mxu1 }
  0xee   :  { %v131_v26 = vadd.f32 %v130_v25, %v32_v24  ;;  %v182_v27 = vpop.f32.mrb[5].mxu1 }
  0xef   :  { %v133_v28 = vpop.f32.mrb[6].mxu1 }
  0xf0   :  { %142 = vst.msk [vmem:[%s284_s3 + $0x20] sm:$0x3] %vm141_vm3, %v131_v26  ;;  %v183_v29 = vpop.f32.mrb[7].mxu1 }

</bundles_post_ra>
